<compile_context>
chip_gen: v5e
topology: v5e:2x2
jax: 0.10.0
libtpu: 0.0.40
codegen_flags: <defaults>
</compile_context>

<pallas_src>
import jax
import jax.numpy as jnp
from jax.experimental import pallas as pl
from jax.experimental.pallas import tpu as pltpu


def _round_up(n, m):
    return (n + m - 1) // m * m


def _cdiv(a, b):
    return -(-a // b)


def _pad2(a, rows, cols):
    return jnp.pad(a, ((0, rows - a.shape[0]), (0, cols - a.shape[1])))


def _t_column(t, batch, dtype=jnp.float32):
    """t as a (batch, 1) column; supports scalar, (B,), or (B,1) t."""
    t_arr = jnp.asarray(t, dtype)
    if t_arr.ndim == 0:
        return jnp.full((batch, 1), t_arr, dtype)
    return t_arr.reshape(batch, 1).astype(dtype)


def _vnet_kernel(x_ref, w1_ref, b1_ref, w2_ref, b2_ref, w3_ref, b3_ref, out_ref):
    # x_ref: (tb, dim+1) bf16 — [x | t] already concatenated in the wrapper.
    mm_dtype = w2_ref.dtype

    # Layer 1: Linear(dim+1 -> hidden) + SiLU (f32 accumulate, f32 activation)
    h = jnp.dot(x_ref[...], w1_ref[...], preferred_element_type=jnp.float32)
    h = h + b1_ref[...]
    h = h * jax.nn.sigmoid(h)

    # Layer 2: Linear(hidden -> hidden) + SiLU
    h = jnp.dot(h.astype(mm_dtype), w2_ref[...], preferred_element_type=jnp.float32)
    h = h + b2_ref[...]
    h = h * jax.nn.sigmoid(h)

    # Layer 3: Linear(hidden -> dim), no activation
    out = jnp.dot(h.astype(mm_dtype), w3_ref[...], preferred_element_type=jnp.float32)
    out = out + b3_ref[...]
    out_ref[...] = out.astype(out_ref.dtype)


def vnet_forward(x, t, params, *, block_b=1024, mm_dtype=jnp.bfloat16):
    """Fused VNet forward.

    x: (B, dim) f32; t: scalar, (B,) or (B,1);
    params: (w1, b1, w2, b2, w3, b3) with weights stored transposed as (in, out),
    w1: (dim+1, hidden).
    """
    w1, b1, w2, b2, w3, b3 = params
    B, dim = x.shape
    hidden = w1.shape[1]
    assert w1.shape[0] == dim + 1

    hid_p = _round_up(hidden, 128)                 # lane-dense hidden dim

    # Balanced batch tile: avoid a near-empty padded final tile; keep the
    # sublane dim a multiple of 16 (bf16 sublane packing).
    n_tiles = max(1, _cdiv(B, block_b))
    tb = _round_up(_cdiv(B, n_tiles), 16)
    b_pad = _round_up(B, tb)
    grid = (b_pad // tb,)

    # Fold t into the (dim+1)-th column of x  (== torch.cat([x, t*ones], 1)).
    x_cat = jnp.concatenate([x.astype(jnp.float32), _t_column(t, B)], axis=1)

    # bf16 MXU operands (f32 accumulate in-kernel); biases stay f32.
    # Zero-padded hidden columns stay exactly zero through bias+SiLU and
    # contribute zero downstream; padded batch rows are sliced off on return.
    x_p  = _pad2(x_cat, b_pad, dim + 1).astype(mm_dtype)
    w1_p = _pad2(w1, dim + 1, hid_p).astype(mm_dtype)
    w2_p = _pad2(w2, hid_p, hid_p).astype(mm_dtype)
    w3_p = _pad2(w3, hid_p, dim).astype(mm_dtype)
    b1_p = _pad2(jnp.asarray(b1, jnp.float32).reshape(1, hidden), 1, hid_p)
    b2_p = _pad2(jnp.asarray(b2, jnp.float32).reshape(1, hidden), 1, hid_p)
    b3_p = jnp.asarray(b3, jnp.float32).reshape(1, dim)

    # VMEM budget: resident weights/biases (worst-case double-buffered) +
    # double-buffered activation tiles + live f32 intermediates, clamped to
    # 3/4 of the physical per-core VMEM (v7x: 64 MiB, v5e/v6e: 128 MiB).
    bpe = jnp.finfo(mm_dtype).bits // 8
    wgt = 2 * (bpe * ((dim + 1) * hid_p + hid_p * hid_p + hid_p * dim)
               + 4 * (2 * hid_p + dim))
    act = 2 * (bpe * tb * (dim + 1) + 4 * tb * dim)
    tmp = 3 * 4 * tb * hid_p
    vmem_limit = int(1.5 * (wgt + act + tmp)) + (2 << 20)
    try:
        vmem_cap = int(pltpu.get_tpu_info().vmem_capacity_bytes)
    except Exception:
        vmem_cap = 64 << 20                        # conservative (v7x per-core)
    vmem_limit = min(max(vmem_limit, 16 << 20), (3 * vmem_cap) // 4)

    flops = 2 * b_pad * ((dim + 1) * hid_p + hid_p * hid_p + hid_p * dim)
    bytes_accessed = (x_p.size * bpe + w1_p.size * bpe + w2_p.size * bpe
                      + w3_p.size * bpe
                      + 4 * (b1_p.size + b2_p.size + b3_p.size)
                      + 4 * b_pad * dim)
    cost = pl.CostEstimate(flops=int(flops),
                           transcendentals=int(2 * b_pad * hid_p),
                           bytes_accessed=int(bytes_accessed))

    def build(const_mode):
        def const(shape):
            return pl.BlockSpec(shape, lambda i: (0, 0), pipeline_mode=const_mode)

        return pl.pallas_call(
            _vnet_kernel,
            out_shape=jax.ShapeDtypeStruct((b_pad, dim), x.dtype),
            grid=grid,
            in_specs=[
                pl.BlockSpec((tb, dim + 1), lambda i: (i, 0)),   # [x | t] tile
                const((dim + 1, hid_p)),                         # W1
                const((1, hid_p)),                               # b1
                const((hid_p, hid_p)),                           # W2
                const((1, hid_p)),                               # b2
                const((hid_p, dim)),                             # W3
                const((1, dim)),                                 # b3
            ],
            out_specs=pl.BlockSpec((tb, dim), lambda i: (i, 0)),
            compiler_params=pltpu.CompilerParams(
                dimension_semantics=("parallel",),
                vmem_limit_bytes=vmem_limit),
            cost_estimate=cost,
        )

    args = (x_p, w1_p, b1_p, w2_p, b2_p, w3_p, b3_p)
    try:
        # Constant-index weight blocks don't need double buffering.
        out_p = build(pl.Buffered(1))(*args)
    except Exception:
        # Fallback: default (double-buffered) pipelining of the const blocks.
        out_p = build(None)(*args)

    return out_p[:B, :]


def init_params(key, dim, hidden):
    """nn.Linear-style init; weights stored transposed as (in, out)."""
    ks = jax.random.split(key, 6)
    s1 = 1.0 / jnp.sqrt(dim + 1.0)
    s2 = 1.0 / jnp.sqrt(float(hidden))
    w1 = jax.random.uniform(ks[0], (dim + 1, hidden), jnp.float32, -s1, s1)
    b1 = jax.random.uniform(ks[1], (1, hidden), jnp.float32, -s1, s1)
    w2 = jax.random.uniform(ks[2], (hidden, hidden), jnp.float32, -s2, s2)
    b2 = jax.random.uniform(ks[3], (1, hidden), jnp.float32, -s2, s2)
    w3 = jax.random.uniform(ks[4], (hidden, dim), jnp.float32, -s2, s2)
    b3 = jax.random.uniform(ks[5], (1, dim), jnp.float32, -s2, s2)
    return (w1, b1, w2, b2, w3, b3)


def vnet_reference(x, t, params, compute_dtype=jnp.float32):
    """Pure-JAX reference of the PyTorch forward.  With compute_dtype=bf16 it
    applies the same operand casts as the kernel (f32 accumulation)."""
    w1, b1, w2, b2, w3, b3 = params
    h = jnp.concatenate([x.astype(jnp.float32), _t_column(t, x.shape[0])], axis=1)

    def lin(h, w, b):
        y = jnp.dot(h.astype(compute_dtype), jnp.asarray(w, compute_dtype),
                    preferred_element_type=jnp.float32)
        return y + jnp.asarray(b, jnp.float32).reshape(1, -1)

    h = lin(h, w1, b1)
    h = h * jax.nn.sigmoid(h)
    h = lin(h, w2, b2)
    h = h * jax.nn.sigmoid(h)
    return lin(h, w3, b3)


if __name__ == "__main__":
    dim, hidden, batch = 4, 128, 8       # hidden=128 matches the module default

    key = jax.random.PRNGKey(0)
    k_param, k_x, k_t = jax.random.split(key, 3)

    params = init_params(k_param, dim, hidden)
    x = jax.random.normal(k_x, (batch, dim), jnp.float32)
    t = jax.random.uniform(k_t, (), jnp.float32)

    out = jax.block_until_ready(vnet_forward(x, t, params))
    assert out.shape == (batch, dim)
    assert out.dtype == x.dtype

    # Tight check against a reference that applies the same bf16 operand casts.
    ref_bf16 = vnet_reference(x, t, params, compute_dtype=jnp.bfloat16)
    assert jnp.allclose(out, ref_bf16, atol=1e-3, rtol=1e-3), "mismatch vs bf16 reference"

    # Loose check against the full-f32 module semantics (covers bf16 cast error).
    ref_f32 = vnet_reference(x, t, params)
    assert jnp.allclose(out, ref_f32, atol=5e-2, rtol=5e-2), "mismatch vs f32 reference"

    print("KERNEL_OK")
</pallas_src>

<mosaic_0001>
module attributes {stable_mosaic.version = 11 : i64} {
  func.func @_vnet_kernel(%arg0: i32, %arg1: memref<16x5xbf16, #tpu.memory_space<vmem>>, %arg2: memref<5x128xbf16, #tpu.memory_space<vmem>>, %arg3: memref<1x128xf32, #tpu.memory_space<vmem>>, %arg4: memref<128x128xbf16, #tpu.memory_space<vmem>>, %arg5: memref<1x128xf32, #tpu.memory_space<vmem>>, %arg6: memref<128x4xbf16, #tpu.memory_space<vmem>>, %arg7: memref<1x4xf32, #tpu.memory_space<vmem>>, %arg8: memref<16x4xf32, #tpu.memory_space<vmem>>) attributes {dimension_semantics = [#tpu.dimension_semantics<parallel>], iteration_bounds = array<i64: 1>, scalar_prefetch = 0 : i64, scratch_operands = 0 : i64, tpu.core_type = #tpu.core_type<tc>, window_params = [{transform_indices = @transform_0, window_bounds = array<i64: 16, 5>}, {pipeline_mode = #tpu.pipeline_mode<synchronous>, transform_indices = @transform_1, window_bounds = array<i64: 5, 128>}, {pipeline_mode = #tpu.pipeline_mode<synchronous>, transform_indices = @transform_2, window_bounds = array<i64: 1, 128>}, {pipeline_mode = #tpu.pipeline_mode<synchronous>, transform_indices = @transform_3, window_bounds = array<i64: 128, 128>}, {pipeline_mode = #tpu.pipeline_mode<synchronous>, transform_indices = @transform_4, window_bounds = array<i64: 1, 128>}, {pipeline_mode = #tpu.pipeline_mode<synchronous>, transform_indices = @transform_5, window_bounds = array<i64: 128, 4>}, {pipeline_mode = #tpu.pipeline_mode<synchronous>, transform_indices = @transform_6, window_bounds = array<i64: 1, 4>}, {transform_indices = @transform_7, window_bounds = array<i64: 16, 4>}]} {
    %c0 = arith.constant 0 : index
    %c0_0 = arith.constant 0 : index
    %0 = vector.load %arg1[%c0, %c0_0] : memref<16x5xbf16, #tpu.memory_space<vmem>>, vector<16x5xbf16>
    %c0_1 = arith.constant 0 : index
    %c0_2 = arith.constant 0 : index
    %1 = vector.load %arg2[%c0_1, %c0_2] : memref<5x128xbf16, #tpu.memory_space<vmem>>, vector<5x128xbf16>
    %cst = arith.constant dense<0.000000e+00> : vector<16x128xf32>
    %2 = tpu.matmul %0, %1, %cst {dimension_numbers = #tpu.dot_dimension_numbers<[1], [0], [0], [1], [0, 0, 1, 1], [], []>} : vector<16x5xbf16>, vector<5x128xbf16>, vector<16x128xf32> -> vector<16x128xf32>
    %c0_3 = arith.constant 0 : index
    %c0_4 = arith.constant 0 : index
    %3 = vector.load %arg3[%c0_3, %c0_4] : memref<1x128xf32, #tpu.memory_space<vmem>>, vector<1x128xf32>
    %4 = vector.broadcast %3 : vector<1x128xf32> to vector<16x128xf32>
    %5 = arith.addf %2, %4 : vector<16x128xf32>
    %6 = arith.negf %5 : vector<16x128xf32>
    %7 = math.exp %6 : vector<16x128xf32>
    %cst_5 = arith.constant 1.000000e+00 : f32
    %8 = vector.broadcast %cst_5 : f32 to vector<16x128xf32>
    %9 = arith.addf %8, %7 : vector<16x128xf32>
    %10 = arith.divf %8, %9 : vector<16x128xf32>
    %11 = arith.mulf %5, %10 : vector<16x128xf32>
    %12 = arith.truncf %11 : vector<16x128xf32> to vector<16x128xbf16>
    %c0_6 = arith.constant 0 : index
    %c0_7 = arith.constant 0 : index
    %13 = vector.load %arg4[%c0_6, %c0_7] : memref<128x128xbf16, #tpu.memory_space<vmem>>, vector<128x128xbf16>
    %cst_8 = arith.constant dense<0.000000e+00> : vector<16x128xf32>
    %14 = tpu.matmul %12, %13, %cst_8 {dimension_numbers = #tpu.dot_dimension_numbers<[1], [0], [0], [1], [0, 0, 1, 1], [], []>} : vector<16x128xbf16>, vector<128x128xbf16>, vector<16x128xf32> -> vector<16x128xf32>
    %c0_9 = arith.constant 0 : index
    %c0_10 = arith.constant 0 : index
    %15 = vector.load %arg5[%c0_9, %c0_10] : memref<1x128xf32, #tpu.memory_space<vmem>>, vector<1x128xf32>
    %16 = vector.broadcast %15 : vector<1x128xf32> to vector<16x128xf32>
    %17 = arith.addf %14, %16 : vector<16x128xf32>
    %18 = arith.negf %17 : vector<16x128xf32>
    %19 = math.exp %18 : vector<16x128xf32>
    %cst_11 = arith.constant 1.000000e+00 : f32
    %20 = vector.broadcast %cst_11 : f32 to vector<16x128xf32>
    %21 = arith.addf %20, %19 : vector<16x128xf32>
    %22 = arith.divf %20, %21 : vector<16x128xf32>
    %23 = arith.mulf %17, %22 : vector<16x128xf32>
    %24 = arith.truncf %23 : vector<16x128xf32> to vector<16x128xbf16>
    %c0_12 = arith.constant 0 : index
    %c0_13 = arith.constant 0 : index
    %25 = vector.load %arg6[%c0_12, %c0_13] : memref<128x4xbf16, #tpu.memory_space<vmem>>, vector<128x4xbf16>
    %cst_14 = arith.constant dense<0.000000e+00> : vector<16x4xf32>
    %26 = tpu.matmul %24, %25, %cst_14 {dimension_numbers = #tpu.dot_dimension_numbers<[1], [0], [0], [1], [0, 0, 1, 1], [], []>} : vector<16x128xbf16>, vector<128x4xbf16>, vector<16x4xf32> -> vector<16x4xf32>
    %c0_15 = arith.constant 0 : index
    %c0_16 = arith.constant 0 : index
    %27 = vector.load %arg7[%c0_15, %c0_16] : memref<1x4xf32, #tpu.memory_space<vmem>>, vector<1x4xf32>
    %28 = vector.broadcast %27 : vector<1x4xf32> to vector<16x4xf32>
    %29 = arith.addf %26, %28 : vector<16x4xf32>
    %c0_17 = arith.constant 0 : index
    %c0_18 = arith.constant 0 : index
    %30 = vector.load %arg8[%c0_17, %c0_18] : memref<16x4xf32, #tpu.memory_space<vmem>>, vector<16x4xf32>
    tpu.vector_store %arg8[%c0_17, %c0_18], %29 {strides = array<i32>} : memref<16x4xf32, #tpu.memory_space<vmem>>, vector<16x4xf32>,
    return
  }
  func.func @transform_0(%arg0: i32) -> (i32, i32) {
    %c0_i32 = arith.constant 0 : i32
    %c0_i32_0 = arith.constant 0 : i32
    return %arg0, %c0_i32 : i32, i32
  }
  func.func @transform_1(%arg0: i32) -> (i32, i32) {
    %c0_i32 = arith.constant 0 : i32
    %c0_i32_0 = arith.constant 0 : i32
    %c0_i32_1 = arith.constant 0 : i32
    return %c0_i32, %c0_i32_0 : i32, i32
  }
  func.func @transform_2(%arg0: i32) -> (i32, i32) {
    %c0_i32 = arith.constant 0 : i32
    %c0_i32_0 = arith.constant 0 : i32
    %c0_i32_1 = arith.constant 0 : i32
    return %c0_i32, %c0_i32_0 : i32, i32
  }
  func.func @transform_3(%arg0: i32) -> (i32, i32) {
    %c0_i32 = arith.constant 0 : i32
    %c0_i32_0 = arith.constant 0 : i32
    %c0_i32_1 = arith.constant 0 : i32
    return %c0_i32, %c0_i32_0 : i32, i32
  }
  func.func @transform_4(%arg0: i32) -> (i32, i32) {
    %c0_i32 = arith.constant 0 : i32
    %c0_i32_0 = arith.constant 0 : i32
    %c0_i32_1 = arith.constant 0 : i32
    return %c0_i32, %c0_i32_0 : i32, i32
  }
  func.func @transform_5(%arg0: i32) -> (i32, i32) {
    %c0_i32 = arith.constant 0 : i32
    %c0_i32_0 = arith.constant 0 : i32
    %c0_i32_1 = arith.constant 0 : i32
    return %c0_i32, %c0_i32_0 : i32, i32
  }
  func.func @transform_6(%arg0: i32) -> (i32, i32) {
    %c0_i32 = arith.constant 0 : i32
    %c0_i32_0 = arith.constant 0 : i32
    %c0_i32_1 = arith.constant 0 : i32
    return %c0_i32, %c0_i32_0 : i32, i32
  }
  func.func @transform_7(%arg0: i32) -> (i32, i32) {
    %c0_i32 = arith.constant 0 : i32
    %c0_i32_0 = arith.constant 0 : i32
    return %arg0, %c0_i32 : i32, i32
  }
}

module attributes {stable_mosaic.version = 11 : i64} {
  func.func @_vnet_kernel(%arg0: i32, %arg1: memref<16x5xbf16, #tpu.memory_space<vmem>>, %arg2: memref<5x128xbf16, #tpu.memory_space<vmem>>, %arg3: memref<1x128xf32, #tpu.memory_space<vmem>>, %arg4: memref<128x128xbf16, #tpu.memory_space<vmem>>, %arg5: memref<1x128xf32, #tpu.memory_space<vmem>>, %arg6: memref<128x4xbf16, #tpu.memory_space<vmem>>, %arg7: memref<1x4xf32, #tpu.memory_space<vmem>>, %arg8: memref<16x4xf32, #tpu.memory_space<vmem>>) attributes {dimension_semantics = [#tpu.dimension_semantics<parallel>], iteration_bounds = array<i64: 1>, scalar_prefetch = 0 : i64, scratch_operands = 0 : i64, tpu.core_type = #tpu.core_type<tc>, window_params = [{transform_indices = @transform_0, window_bounds = array<i64: 16, 5>}, {pipeline_mode = #tpu.pipeline_mode<synchronous>, transform_indices = @transform_1, window_bounds = array<i64: 5, 128>}, {pipeline_mode = #tpu.pipeline_mode<synchronous>, transform_indices = @transform_2, window_bounds = array<i64: 1, 128>}, {pipeline_mode = #tpu.pipeline_mode<synchronous>, transform_indices = @transform_3, window_bounds = array<i64: 128, 128>}, {pipeline_mode = #tpu.pipeline_mode<synchronous>, transform_indices = @transform_4, window_bounds = array<i64: 1, 128>}, {pipeline_mode = #tpu.pipeline_mode<synchronous>, transform_indices = @transform_5, window_bounds = array<i64: 128, 4>}, {pipeline_mode = #tpu.pipeline_mode<synchronous>, transform_indices = @transform_6, window_bounds = array<i64: 1, 4>}, {transform_indices = @transform_7, window_bounds = array<i64: 16, 4>}]} {
    %c0 = arith.constant 0 : index
    %c0_0 = arith.constant 0 : index
    %0 = vector.load %arg1[%c0, %c0_0] : memref<16x5xbf16, #tpu.memory_space<vmem>>, vector<16x5xbf16>
    %c0_1 = arith.constant 0 : index
    %c0_2 = arith.constant 0 : index
    %1 = vector.load %arg2[%c0_1, %c0_2] : memref<5x128xbf16, #tpu.memory_space<vmem>>, vector<5x128xbf16>
    %cst = arith.constant dense<0.000000e+00> : vector<16x128xf32>
    %2 = tpu.matmul %0, %1, %cst {dimension_numbers = #tpu.dot_dimension_numbers<[1], [0], [0], [1], [0, 0, 1, 1], [], []>} : vector<16x5xbf16>, vector<5x128xbf16>, vector<16x128xf32> -> vector<16x128xf32>
    %c0_3 = arith.constant 0 : index
    %c0_4 = arith.constant 0 : index
    %3 = vector.load %arg3[%c0_3, %c0_4] : memref<1x128xf32, #tpu.memory_space<vmem>>, vector<1x128xf32>
    %4 = vector.broadcast %3 : vector<1x128xf32> to vector<16x128xf32>
    %5 = arith.addf %2, %4 : vector<16x128xf32>
    %6 = arith.negf %5 : vector<16x128xf32>
    %7 = math.exp %6 : vector<16x128xf32>
    %cst_5 = arith.constant 1.000000e+00 : f32
    %8 = vector.broadcast %cst_5 : f32 to vector<16x128xf32>
    %9 = arith.addf %8, %7 : vector<16x128xf32>
    %10 = arith.divf %8, %9 : vector<16x128xf32>
    %11 = arith.mulf %5, %10 : vector<16x128xf32>
    %12 = arith.truncf %11 : vector<16x128xf32> to vector<16x128xbf16>
    %c0_6 = arith.constant 0 : index
    %c0_7 = arith.constant 0 : index
    %13 = vector.load %arg4[%c0_6, %c0_7] : memref<128x128xbf16, #tpu.memory_space<vmem>>, vector<128x128xbf16>
    %cst_8 = arith.constant dense<0.000000e+00> : vector<16x128xf32>
    %14 = tpu.matmul %12, %13, %cst_8 {dimension_numbers = #tpu.dot_dimension_numbers<[1], [0], [0], [1], [0, 0, 1, 1], [], []>} : vector<16x128xbf16>, vector<128x128xbf16>, vector<16x128xf32> -> vector<16x128xf32>
    %c0_9 = arith.constant 0 : index
    %c0_10 = arith.constant 0 : index
    %15 = vector.load %arg5[%c0_9, %c0_10] : memref<1x128xf32, #tpu.memory_space<vmem>>, vector<1x128xf32>
    %16 = vector.broadcast %15 : vector<1x128xf32> to vector<16x128xf32>
    %17 = arith.addf %14, %16 : vector<16x128xf32>
    %18 = arith.negf %17 : vector<16x128xf32>
    %19 = math.exp %18 : vector<16x128xf32>
    %cst_11 = arith.constant 1.000000e+00 : f32
    %20 = vector.broadcast %cst_11 : f32 to vector<16x128xf32>
    %21 = arith.addf %20, %19 : vector<16x128xf32>
    %22 = arith.divf %20, %21 : vector<16x128xf32>
    %23 = arith.mulf %17, %22 : vector<16x128xf32>
    %24 = arith.truncf %23 : vector<16x128xf32> to vector<16x128xbf16>
    %c0_12 = arith.constant 0 : index
    %c0_13 = arith.constant 0 : index
    %25 = vector.load %arg6[%c0_12, %c0_13] : memref<128x4xbf16, #tpu.memory_space<vmem>>, vector<128x4xbf16>
    %cst_14 = arith.constant dense<0.000000e+00> : vector<16x4xf32>
    %26 = tpu.matmul %24, %25, %cst_14 {dimension_numbers = #tpu.dot_dimension_numbers<[1], [0], [0], [1], [0, 0, 1, 1], [], []>} : vector<16x128xbf16>, vector<128x4xbf16>, vector<16x4xf32> -> vector<16x4xf32>
    %c0_15 = arith.constant 0 : index
    %c0_16 = arith.constant 0 : index
    %27 = vector.load %arg7[%c0_15, %c0_16] : memref<1x4xf32, #tpu.memory_space<vmem>>, vector<1x4xf32>
    %28 = vector.broadcast %27 : vector<1x4xf32> to vector<16x4xf32>
    %29 = arith.addf %26, %28 : vector<16x4xf32>
    %c0_17 = arith.constant 0 : index
    %c0_18 = arith.constant 0 : index
    %30 = vector.load %arg8[%c0_17, %c0_18] : memref<16x4xf32, #tpu.memory_space<vmem>>, vector<16x4xf32>
    tpu.vector_store %arg8[%c0_17, %c0_18], %29 {strides = array<i32>} : memref<16x4xf32, #tpu.memory_space<vmem>>, vector<16x4xf32>,
    return
  }
  func.func @transform_0(%arg0: i32) -> (i32, i32) {
    %c0_i32 = arith.constant 0 : i32
    %c0_i32_0 = arith.constant 0 : i32
    return %arg0, %c0_i32 : i32, i32
  }
  func.func @transform_1(%arg0: i32) -> (i32, i32) {
    %c0_i32 = arith.constant 0 : i32
    %c0_i32_0 = arith.constant 0 : i32
    %c0_i32_1 = arith.constant 0 : i32
    return %c0_i32, %c0_i32_0 : i32, i32
  }
  func.func @transform_2(%arg0: i32) -> (i32, i32) {
    %c0_i32 = arith.constant 0 : i32
    %c0_i32_0 = arith.constant 0 : i32
    %c0_i32_1 = arith.constant 0 : i32
    return %c0_i32, %c0_i32_0 : i32, i32
  }
  func.func @transform_3(%arg0: i32) -> (i32, i32) {
    %c0_i32 = arith.constant 0 : i32
    %c0_i32_0 = arith.constant 0 : i32
    %c0_i32_1 = arith.constant 0 : i32
    return %c0_i32, %c0_i32_0 : i32, i32
  }
  func.func @transform_4(%arg0: i32) -> (i32, i32) {
    %c0_i32 = arith.constant 0 : i32
    %c0_i32_0 = arith.constant 0 : i32
    %c0_i32_1 = arith.constant 0 : i32
    return %c0_i32, %c0_i32_0 : i32, i32
  }
  func.func @transform_5(%arg0: i32) -> (i32, i32) {
    %c0_i32 = arith.constant 0 : i32
    %c0_i32_0 = arith.constant 0 : i32
    %c0_i32_1 = arith.constant 0 : i32
    return %c0_i32, %c0_i32_0 : i32, i32
  }
  func.func @transform_6(%arg0: i32) -> (i32, i32) {
    %c0_i32 = arith.constant 0 : i32
    %c0_i32_0 = arith.constant 0 : i32
    %c0_i32_1 = arith.constant 0 : i32
    return %c0_i32, %c0_i32_0 : i32, i32
  }
  func.func @transform_7(%arg0: i32) -> (i32, i32) {
    %c0_i32 = arith.constant 0 : i32
    %c0_i32_0 = arith.constant 0 : i32
    return %arg0, %c0_i32 : i32, i32
  }
}

</mosaic_0001>

<bundles_post_ra>
// kernel: tpu_custom_call.1
= control target key start
LH: loop header
LB: loop body
LE: loop exit
PB: predicated region body
PF: predicated region fallthrough
CT: control target
= control target key end

     0   :  { %vm43_vm0 = vcmask 1041408   ;;  %vm44_vm1 = vcmask 1042432   ;;  %v427_v1 = vmov 65535   ;;  %vm39_vm2 = vcmask 39936   ;;  %s537_s1 = inlined_call_operand.vmem [shape: bf16[5,128], index: 1, kind: input, shape index: {}]   ;;  %s538_s2 = inlined_call_operand.vmem [shape: f32[1,128], index: 2, kind: input, shape index: {}]   ;;  %s539_s0 = inlined_call_operand.vmem [shape: bf16[16,5], index: 0, kind: input, shape index: {}]   ;;  %s540_s4 = inlined_call_operand.vmem [shape: f32[1,128], index: 4, kind: input, shape index: {}]   ;;  %s541_s3 = inlined_call_operand.vmem [shape: bf16[128,128], index: 3, kind: input, shape index: {}]   ;;  %s542_s6 = inlined_call_operand.vmem [shape: f32[1,4], index: 6, kind: input, shape index: {}]   ;;  %s543_s5 = inlined_call_operand.vmem [shape: bf16[128,4], index: 5, kind: input, shape index: {}]   ;;  %s544_s7 = inlined_call_operand.vmem [shape: f32[16,4], index: 7, kind: output, shape index: {}]  }
   0x1   :  { %v29_v0 = vld [vmem:[%s537_s1] sm:$0x7]  ;;  %v45_v2 = vsel %vm43_vm0, 4294967295, %v427_v1  ;;  %v398_v6 = vld [vmem:[%s541_s3 + $0x38] sm:$0xff]  ;;  %v397_v7 = vld [vmem:[%s541_s3 + $0x30] sm:$0xff] }
   0x2   :  { %v46_v3 = vsel %vm44_vm1, %v45_v2, 0  ;;  %v390_v5 = vld [vmem:[%s539_s0] sm:$0xff]  ;;  %173 = vmatpush.bf16.msra.mxu1 %v398_v6  ;;  %v396_v8 = vld [vmem:[%s541_s3 + $0x28] sm:$0xff]  ;;  %v394_v10 = vld [vmem:[%s541_s3 + $0x18] sm:$0xff] }
   0x3   :  { %v48_v4 = vand.u32 %v46_v3, %v29_v0  ;;  %v395_v9 = vld [vmem:[%s541_s3 + $0x20] sm:$0xff]  ;;  %v393_v12 = vld [vmem:[%s541_s3 + $0x10] sm:$0xff]  ;;  %v392_v15 = vld [vmem:[%s541_s3 + $0x8] sm:$0xff] }
   0x4   :  { %v408_v11 = vld [vmem:[%s538_s2] ss:$0 sm:$0xff]  ;;  %v406_v48 = vld [vmem:[%s543_s5 + $0x38] sm:$0xff]  ;;  %v405_v49 = vld [vmem:[%s543_s5 + $0x30] sm:$0xff] }
   0x5   :  { %57 = vmatpush.bf16.msra.mxu0 %v48_v4  ;;  %v391_v17 = vld [vmem:[%s541_s3] sm:$0xff]  ;;  %296 = vmatpush.bf16.msra.mxu2 %v406_v48  ;;  %v404_v50 = vld [vmem:[%s543_s5 + $0x28] sm:$0xff]  ;;  %v402_v52 = vld [vmem:[%s543_s5 + $0x18] sm:$0xff] }
   0x6   :  { %174 = vmatpush.bf16.msra.mxu1 %v397_v7  ;;  %v403_v51 = vld [vmem:[%s543_s5 + $0x20] sm:$0xff]  ;;  %v401_v54 = vld [vmem:[%s543_s5 + $0x10] sm:$0xff]  ;;  %v400_v57 = vld [vmem:[%s543_s5 + $0x8] sm:$0xff] }
   0x7   :  { %v409_v53 = vld [vmem:[%s540_s4] ss:$0 sm:$0xff] }
   0x8   :  { %321 = vmatmul.msk.bf16.vlgmr.msra.gmra.mxu0 %vm39_vm2, %v390_v5  ;;  %v399_v59 = vld [vmem:[%s543_s5] sm:$0xff] }
   0x9   :  { %297 = vmatpush.bf16.msra.mxu2 %v405_v49 }
   0xa   :  { %175 = vmatpush.bf16.msra.mxu1 %v396_v8 }
   0xd   :  { %298 = vmatpush.bf16.msra.mxu2 %v404_v50 }
   0xe   :  { %176 = vmatpush.bf16.msra.mxu1 %v395_v9 }
  0x11   :  { %299 = vmatpush.bf16.msra.mxu2 %v403_v51 }
  0x12   :  { %177 = vmatpush.bf16.msra.mxu1 %v394_v10 }
  0x15   :  { %300 = vmatpush.bf16.msra.mxu2 %v402_v52 }
  0x16   :  { %178 = vmatpush.bf16.msra.mxu1 %v393_v12 }
  0x19   :  { %301 = vmatpush.bf16.msra.mxu2 %v401_v54 }
  0x1a   :  { %179 = vmatpush.bf16.msra.mxu1 %v392_v15 }
  0x1d   :  { %302 = vmatpush.bf16.msra.mxu2 %v400_v57 }
  0x1e   :  { %180 = vmatpush.bf16.msra.mxu1 %v391_v17 }
  0x21   :  { %303 = vmatpush.bf16.msra.mxu2 %v399_v59 }
  0x85   :  { %v59_v13 = vpop.f32.mrf.mxu0 }
  0x86   :  { %v60_v14 = vadd.f32 %v408_v11, %v59_v13 }
  0x88   :  { %v322_v16 = vmul.f32 -1.442695, %v60_v14 }
  0x8a   :  { %411 = vpow2.f32 %v322_v16 }
  0x8d   :  { %v61_v18 = vpop.f32.mrf.mxu0 }
  0x8e   :  { %v62_v19 = vadd.f32 %v408_v11, %v61_v18 }
  0x90   :  { %v412_v20 = vpop.eup %411  ;;  %v323_v21 = vmul.f32 -1.442695, %v62_v19 }
  0x91   :  { %v70_v22 = vadd.f32 1.0, %v412_v20 }
  0x92   :  { %413 = vpow2.f32 %v323_v21 }
  0x93   :  { %415 = vrcp.f32 %v70_v22  ;;  %v83_v32 = vand.u32 2147483648, %v70_v22  ;;  %vm77_vm4 = vweird.f32 %v70_v22  ;;  %v81_v33 = vand.u32 2147483647, %v70_v22 }
  0x95   :  { %v84_v39 = vor.u32 1.1754944e-38, %v83_v32  ;;  %vm82_vm7 = vcmp.eq.f32.partialorder %v81_v33, 8.507059e+37 }
  0x98   :  { %v414_v23 = vpop.eup %413 }
  0x99   :  { %v416_v24 = vpop.eup %415  ;;  %v71_v25 = vadd.f32 1.0, %v414_v23 }
  0x9a   :  { %v73_v26 = vmul.f32 %v416_v24, %v70_v22  ;;  %vm78_vm3 = vweird.f32 %v416_v24 }
  0x9b   :  { %417 = vrcp.f32 %v71_v25  ;;  %vm79_vm5 = vmor %vm77_vm4, %vm78_vm3  ;;  %v98_v35 = vand.u32 2147483648, %v71_v25  ;;  %v96_v38 = vand.u32 2147483647, %v71_v25  ;;  %vm92_vm8 = vweird.f32 %v71_v25 }
  0x9c   :  { %v74_v27 = vsub.f32 1.0, %v73_v26  ;;  %v410_v26 = vld [vmem:[%s542_s6] ss:$0 sm:$0xff]  ;;  %vm310_vm3 = vcmask 31744  }
  0x9d   :  { %v99_v42 = vor.u32 1.1754944e-38, %v98_v35  ;;  %vm97_vm10 = vcmp.eq.f32.partialorder %v96_v38, 8.507059e+37 }
  0x9e   :  { %v75_v28 = vmul.f32 %v416_v24, %v74_v27 }
  0xa0   :  { %v76_v30 = vadd.f32 %v416_v24, %v75_v28 }
  0xa1   :  { %v418_v29 = vpop.eup %417 }
  0xa2   :  { %v88_v31 = vmul.f32 %v418_v29, %v71_v25  ;;  %v80_v36 = vsel %vm79_vm5, %v416_v24, %v76_v30  ;;  %vm93_vm6 = vweird.f32 %v418_v29 }
  0xa3   :  { %v85_v41 = vsel %vm82_vm7, %v84_v39, %v80_v36  ;;  %vm94_vm9 = vmor %vm92_vm8, %vm93_vm6 }
  0xa4   :  { %v89_v34 = vsub.f32 1.0, %v88_v31  ;;  %v102_v45 = vmul.f32 %v85_v41, %v60_v14 }
  0xa6   :  { %v90_v37 = vmul.f32 %v418_v29, %v89_v34 }
  0xa8   :  { %v91_v40 = vadd.f32 %v418_v29, %v90_v37 }
  0xaa   :  { %v95_v43 = vsel %vm94_vm9, %v418_v29, %v91_v40 }
  0xab   :  { %v100_v44 = vsel %vm97_vm10, %v99_v42, %v95_v43 }
  0xac   :  { %v103_v46 = vmul.f32 %v100_v44, %v62_v19 }
  0xae   :  { %v104_v47 = vpack.c.bf16 %v103_v46, %v102_v45 }
  0xb0   :  { %181 = vmatmul.bf16.vlgmr.msra.gmra.mxu1 %v104_v47 }
 0x12d   :  { %v182_v55 = vpop.f32.mrf.mxu1 }
 0x12e   :  { %v183_v56 = vadd.f32 %v409_v53, %v182_v55 }
 0x130   :  { %v356_v58 = vmul.f32 -1.442695, %v183_v56 }
 0x132   :  { %419 = vpow2.f32 %v356_v58 }
 0x135   :  { %v184_v60 = vpop.f32.mrf.mxu1 }
 0x136   :  { %v185_v61 = vadd.f32 %v409_v53, %v184_v60 }
 0x138   :  { %v420_v62 = vpop.eup %419  ;;  %v357_v63 = vmul.f32 -1.442695, %v185_v61 }
 0x139   :  { %v193_v0 = vadd.f32 1.0, %v420_v62 }
 0x13a   :  { %421 = vpow2.f32 %v357_v63 }
 0x13b   :  { %423 = vrcp.f32 %v193_v0  ;;  %v206_v10 = vand.u32 2147483648, %v193_v0  ;;  %vm200_vm12 = vweird.f32 %v193_v0  ;;  %v204_v11 = vand.u32 2147483647, %v193_v0 }
 0x13d   :  { %v207_v17 = vor.u32 1.1754944e-38, %v206_v10  ;;  %vm205_vm15 = vcmp.eq.f32.partialorder %v204_v11, 8.507059e+37 }
 0x140   :  { %v422_v1 = vpop.eup %421 }
 0x141   :  { %v424_v2 = vpop.eup %423  ;;  %v194_v3 = vadd.f32 1.0, %v422_v1 }
 0x142   :  { %v196_v4 = vmul.f32 %v424_v2, %v193_v0  ;;  %vm201_vm11 = vweird.f32 %v424_v2 }
 0x143   :  { %425 = vrcp.f32 %v194_v3  ;;  %vm202_vm13 = vmor %vm200_vm12, %vm201_vm11  ;;  %v221_v13 = vand.u32 2147483648, %v194_v3  ;;  %v219_v16 = vand.u32 2147483647, %v194_v3  ;;  %vm215_vm0 = vweird.f32 %v194_v3 }
 0x144   :  { %v197_v5 = vsub.f32 1.0, %v196_v4 }
 0x145   :  { %v222_v20 = vor.u32 1.1754944e-38, %v221_v13  ;;  %vm220_vm2 = vcmp.eq.f32.partialorder %v219_v16, 8.507059e+37 }
 0x146   :  { %v198_v6 = vmul.f32 %v424_v2, %v197_v5 }
 0x148   :  { %v199_v8 = vadd.f32 %v424_v2, %v198_v6 }
 0x149   :  { %v426_v7 = vpop.eup %425 }
 0x14a   :  { %v211_v9 = vmul.f32 %v426_v7, %v194_v3  ;;  %v203_v14 = vsel %vm202_vm13, %v424_v2, %v199_v8  ;;  %vm216_vm14 = vweird.f32 %v426_v7 }
 0x14b   :  { %v208_v19 = vsel %vm205_vm15, %v207_v17, %v203_v14  ;;  %vm217_vm1 = vmor %vm215_vm0, %vm216_vm14 }
 0x14c   :  { %v212_v12 = vsub.f32 1.0, %v211_v9  ;;  %v225_v23 = vmul.f32 %v208_v19, %v183_v56 }
 0x14e   :  { %v213_v15 = vmul.f32 %v426_v7, %v212_v12 }
 0x150   :  { %v214_v18 = vadd.f32 %v426_v7, %v213_v15 }
 0x152   :  { %v218_v21 = vsel %vm217_vm1, %v426_v7, %v214_v18 }
 0x153   :  { %v223_v22 = vsel %vm220_vm2, %v222_v20, %v218_v21 }
 0x154   :  { %v226_v24 = vmul.f32 %v223_v22, %v185_v61 }
 0x156   :  { %v227_v25 = vpack.c.bf16 %v226_v24, %v225_v23 }
 0x158   :  { %304 = vmatmul.bf16.vlgmr.msra.gmra.mxu2 %v227_v25 }
 0x1db   :  { %v305_v27 = vpop.f32.mrf.mxu2 }
 0x1dc   :  { %v306_v28 = vadd.f32 %v410_v26, %v305_v27 }
 0x1de   :  { %311 = vst.msk [vmem:[%s544_s7] sm:$0xff] %vm310_vm3, %v306_v28 }
 0x1e3   :  { %v307_v29 = vpop.f32.mrf.mxu2 }
 0x1e4   :  { %v308_v30 = vadd.f32 %v410_v26, %v307_v29 }
 0x1e6   :  { %312 = vst.msk [vmem:[%s544_s7 + $0x8] sm:$0xff] %vm310_vm3, %v308_v30 }

// kernel: tpu_custom_call.1
= control target key start
LH: loop header
LB: loop body
LE: loop exit
PB: predicated region body
PF: predicated region fallthrough
CT: control target
= control target key end

     0   :  { %vm43_vm0 = vcmask 1041408   ;;  %vm44_vm1 = vcmask 1042432   ;;  %v427_v1 = vmov 65535   ;;  %vm39_vm2 = vcmask 39936   ;;  %s537_s1 = inlined_call_operand.vmem [shape: bf16[5,128], index: 1, kind: input, shape index: {}]   ;;  %s538_s2 = inlined_call_operand.vmem [shape: f32[1,128], index: 2, kind: input, shape index: {}]   ;;  %s539_s0 = inlined_call_operand.vmem [shape: bf16[16,5], index: 0, kind: input, shape index: {}]   ;;  %s540_s4 = inlined_call_operand.vmem [shape: f32[1,128], index: 4, kind: input, shape index: {}]   ;;  %s541_s3 = inlined_call_operand.vmem [shape: bf16[128,128], index: 3, kind: input, shape index: {}]   ;;  %s542_s6 = inlined_call_operand.vmem [shape: f32[1,4], index: 6, kind: input, shape index: {}]   ;;  %s543_s5 = inlined_call_operand.vmem [shape: bf16[128,4], index: 5, kind: input, shape index: {}]   ;;  %s544_s7 = inlined_call_operand.vmem [shape: f32[16,4], index: 7, kind: output, shape index: {}]  }
   0x1   :  { %v29_v0 = vld [vmem:[%s537_s1] sm:$0x7]  ;;  %v45_v2 = vsel %vm43_vm0, 4294967295, %v427_v1  ;;  %v398_v6 = vld [vmem:[%s541_s3 + $0x38] sm:$0xff]  ;;  %v397_v7 = vld [vmem:[%s541_s3 + $0x30] sm:$0xff] }
   0x2   :  { %v46_v3 = vsel %vm44_vm1, %v45_v2, 0  ;;  %v390_v5 = vld [vmem:[%s539_s0] sm:$0xff]  ;;  %173 = vmatpush.bf16.msra.mxu1 %v398_v6  ;;  %v396_v8 = vld [vmem:[%s541_s3 + $0x28] sm:$0xff]  ;;  %v394_v10 = vld [vmem:[%s541_s3 + $0x18] sm:$0xff] }
   0x3   :  { %v48_v4 = vand.u32 %v46_v3, %v29_v0  ;;  %v395_v9 = vld [vmem:[%s541_s3 + $0x20] sm:$0xff]  ;;  %v393_v12 = vld [vmem:[%s541_s3 + $0x10] sm:$0xff]  ;;  %v392_v15 = vld [vmem:[%s541_s3 + $0x8] sm:$0xff] }
   0x4   :  { %v408_v11 = vld [vmem:[%s538_s2] ss:$0 sm:$0xff]  ;;  %v406_v48 = vld [vmem:[%s543_s5 + $0x38] sm:$0xff]  ;;  %v405_v49 = vld [vmem:[%s543_s5 + $0x30] sm:$0xff] }
   0x5   :  { %57 = vmatpush.bf16.msra.mxu0 %v48_v4  ;;  %v391_v17 = vld [vmem:[%s541_s3] sm:$0xff]  ;;  %296 = vmatpush.bf16.msra.mxu2 %v406_v48  ;;  %v404_v50 = vld [vmem:[%s543_s5 + $0x28] sm:$0xff]  ;;  %v402_v52 = vld [vmem:[%s543_s5 + $0x18] sm:$0xff] }
   0x6   :  { %174 = vmatpush.bf16.msra.mxu1 %v397_v7  ;;  %v403_v51 = vld [vmem:[%s543_s5 + $0x20] sm:$0xff]  ;;  %v401_v54 = vld [vmem:[%s543_s5 + $0x10] sm:$0xff]  ;;  %v400_v57 = vld [vmem:[%s543_s5 + $0x8] sm:$0xff] }
   0x7   :  { %v409_v53 = vld [vmem:[%s540_s4] ss:$0 sm:$0xff] }
   0x8   :  { %321 = vmatmul.msk.bf16.vlgmr.msra.gmra.mxu0 %vm39_vm2, %v390_v5  ;;  %v399_v59 = vld [vmem:[%s543_s5] sm:$0xff] }
   0x9   :  { %297 = vmatpush.bf16.msra.mxu2 %v405_v49 }
   0xa   :  { %175 = vmatpush.bf16.msra.mxu1 %v396_v8 }
   0xd   :  { %298 = vmatpush.bf16.msra.mxu2 %v404_v50 }
   0xe   :  { %176 = vmatpush.bf16.msra.mxu1 %v395_v9 }
  0x11   :  { %299 = vmatpush.bf16.msra.mxu2 %v403_v51 }
  0x12   :  { %177 = vmatpush.bf16.msra.mxu1 %v394_v10 }
  0x15   :  { %300 = vmatpush.bf16.msra.mxu2 %v402_v52 }
  0x16   :  { %178 = vmatpush.bf16.msra.mxu1 %v393_v12 }
  0x19   :  { %301 = vmatpush.bf16.msra.mxu2 %v401_v54 }
  0x1a   :  { %179 = vmatpush.bf16.msra.mxu1 %v392_v15 }
  0x1d   :  { %302 = vmatpush.bf16.msra.mxu2 %v400_v57 }
  0x1e   :  { %180 = vmatpush.bf16.msra.mxu1 %v391_v17 }
  0x21   :  { %303 = vmatpush.bf16.msra.mxu2 %v399_v59 }
  0x85   :  { %v59_v13 = vpop.f32.mrf.mxu0 }
  0x86   :  { %v60_v14 = vadd.f32 %v408_v11, %v59_v13 }
  0x88   :  { %v322_v16 = vmul.f32 -1.442695, %v60_v14 }
  0x8a   :  { %411 = vpow2.f32 %v322_v16 }
  0x8d   :  { %v61_v18 = vpop.f32.mrf.mxu0 }
  0x8e   :  { %v62_v19 = vadd.f32 %v408_v11, %v61_v18 }
  0x90   :  { %v412_v20 = vpop.eup %411  ;;  %v323_v21 = vmul.f32 -1.442695, %v62_v19 }
  0x91   :  { %v70_v22 = vadd.f32 1.0, %v412_v20 }
  0x92   :  { %413 = vpow2.f32 %v323_v21 }
  0x93   :  { %415 = vrcp.f32 %v70_v22  ;;  %v83_v32 = vand.u32 2147483648, %v70_v22  ;;  %vm77_vm4 = vweird.f32 %v70_v22  ;;  %v81_v33 = vand.u32 2147483647, %v70_v22 }
  0x95   :  { %v84_v39 = vor.u32 1.1754944e-38, %v83_v32  ;;  %vm82_vm7 = vcmp.eq.f32.partialorder %v81_v33, 8.507059e+37 }
  0x98   :  { %v414_v23 = vpop.eup %413 }
  0x99   :  { %v416_v24 = vpop.eup %415  ;;  %v71_v25 = vadd.f32 1.0, %v414_v23 }
  0x9a   :  { %v73_v26 = vmul.f32 %v416_v24, %v70_v22  ;;  %vm78_vm3 = vweird.f32 %v416_v24 }
  0x9b   :  { %417 = vrcp.f32 %v71_v25  ;;  %vm79_vm5 = vmor %vm77_vm4, %vm78_vm3  ;;  %v98_v35 = vand.u32 2147483648, %v71_v25  ;;  %v96_v38 = vand.u32 2147483647, %v71_v25  ;;  %vm92_vm8 = vweird.f32 %v71_v25 }
  0x9c   :  { %v74_v27 = vsub.f32 1.0, %v73_v26  ;;  %v410_v26 = vld [vmem:[%s542_s6] ss:$0 sm:$0xff]  ;;  %vm310_vm3 = vcmask 31744  }
  0x9d   :  { %v99_v42 = vor.u32 1.1754944e-38, %v98_v35  ;;  %vm97_vm10 = vcmp.eq.f32.partialorder %v96_v38, 8.507059e+37 }
  0x9e   :  { %v75_v28 = vmul.f32 %v416_v24, %v74_v27 }
  0xa0   :  { %v76_v30 = vadd.f32 %v416_v24, %v75_v28 }
  0xa1   :  { %v418_v29 = vpop.eup %417 }
  0xa2   :  { %v88_v31 = vmul.f32 %v418_v29, %v71_v25  ;;  %v80_v36 = vsel %vm79_vm5, %v416_v24, %v76_v30  ;;  %vm93_vm6 = vweird.f32 %v418_v29 }
  0xa3   :  { %v85_v41 = vsel %vm82_vm7, %v84_v39, %v80_v36  ;;  %vm94_vm9 = vmor %vm92_vm8, %vm93_vm6 }
  0xa4   :  { %v89_v34 = vsub.f32 1.0, %v88_v31  ;;  %v102_v45 = vmul.f32 %v85_v41, %v60_v14 }
  0xa6   :  { %v90_v37 = vmul.f32 %v418_v29, %v89_v34 }
  0xa8   :  { %v91_v40 = vadd.f32 %v418_v29, %v90_v37 }
  0xaa   :  { %v95_v43 = vsel %vm94_vm9, %v418_v29, %v91_v40 }
  0xab   :  { %v100_v44 = vsel %vm97_vm10, %v99_v42, %v95_v43 }
  0xac   :  { %v103_v46 = vmul.f32 %v100_v44, %v62_v19 }
  0xae   :  { %v104_v47 = vpack.c.bf16 %v103_v46, %v102_v45 }
  0xb0   :  { %181 = vmatmul.bf16.vlgmr.msra.gmra.mxu1 %v104_v47 }
 0x12d   :  { %v182_v55 = vpop.f32.mrf.mxu1 }
 0x12e   :  { %v183_v56 = vadd.f32 %v409_v53, %v182_v55 }
 0x130   :  { %v356_v58 = vmul.f32 -1.442695, %v183_v56 }
 0x132   :  { %419 = vpow2.f32 %v356_v58 }
 0x135   :  { %v184_v60 = vpop.f32.mrf.mxu1 }
 0x136   :  { %v185_v61 = vadd.f32 %v409_v53, %v184_v60 }
 0x138   :  { %v420_v62 = vpop.eup %419  ;;  %v357_v63 = vmul.f32 -1.442695, %v185_v61 }
 0x139   :  { %v193_v0 = vadd.f32 1.0, %v420_v62 }
 0x13a   :  { %421 = vpow2.f32 %v357_v63 }
 0x13b   :  { %423 = vrcp.f32 %v193_v0  ;;  %v206_v10 = vand.u32 2147483648, %v193_v0  ;;  %vm200_vm12 = vweird.f32 %v193_v0  ;;  %v204_v11 = vand.u32 2147483647, %v193_v0 }
 0x13d   :  { %v207_v17 = vor.u32 1.1754944e-38, %v206_v10  ;;  %vm205_vm15 = vcmp.eq.f32.partialorder %v204_v11, 8.507059e+37 }
 0x140   :  { %v422_v1 = vpop.eup %421 }
 0x141   :  { %v424_v2 = vpop.eup %423  ;;  %v194_v3 = vadd.f32 1.0, %v422_v1 }
 0x142   :  { %v196_v4 = vmul.f32 %v424_v2, %v193_v0  ;;  %vm201_vm11 = vweird.f32 %v424_v2 }
 0x143   :  { %425 = vrcp.f32 %v194_v3  ;;  %vm202_vm13 = vmor %vm200_vm12, %vm201_vm11  ;;  %v221_v13 = vand.u32 2147483648, %v194_v3  ;;  %v219_v16 = vand.u32 2147483647, %v194_v3  ;;  %vm215_vm0 = vweird.f32 %v194_v3 }
 0x144   :  { %v197_v5 = vsub.f32 1.0, %v196_v4 }
 0x145   :  { %v222_v20 = vor.u32 1.1754944e-38, %v221_v13  ;;  %vm220_vm2 = vcmp.eq.f32.partialorder %v219_v16, 8.507059e+37 }
 0x146   :  { %v198_v6 = vmul.f32 %v424_v2, %v197_v5 }
 0x148   :  { %v199_v8 = vadd.f32 %v424_v2, %v198_v6 }
 0x149   :  { %v426_v7 = vpop.eup %425 }
 0x14a   :  { %v211_v9 = vmul.f32 %v426_v7, %v194_v3  ;;  %v203_v14 = vsel %vm202_vm13, %v424_v2, %v199_v8  ;;  %vm216_vm14 = vweird.f32 %v426_v7 }
 0x14b   :  { %v208_v19 = vsel %vm205_vm15, %v207_v17, %v203_v14  ;;  %vm217_vm1 = vmor %vm215_vm0, %vm216_vm14 }
 0x14c   :  { %v212_v12 = vsub.f32 1.0, %v211_v9  ;;  %v225_v23 = vmul.f32 %v208_v19, %v183_v56 }
 0x14e   :  { %v213_v15 = vmul.f32 %v426_v7, %v212_v12 }
 0x150   :  { %v214_v18 = vadd.f32 %v426_v7, %v213_v15 }
 0x152   :  { %v218_v21 = vsel %vm217_vm1, %v426_v7, %v214_v18 }
 0x153   :  { %v223_v22 = vsel %vm220_vm2, %v222_v20, %v218_v21 }
 0x154   :  { %v226_v24 = vmul.f32 %v223_v22, %v185_v61 }
 0x156   :  { %v227_v25 = vpack.c.bf16 %v226_v24, %v225_v23 }
 0x158   :  { %304 = vmatmul.bf16.vlgmr.msra.gmra.mxu2 %v227_v25 }
 0x1db   :  { %v305_v27 = vpop.f32.mrf.mxu2 }
 0x1dc   :  { %v306_v28 = vadd.f32 %v410_v26, %v305_v27 }
 0x1de   :  { %311 = vst.msk [vmem:[%s544_s7] sm:$0xff] %vm310_vm3, %v306_v28 }
 0x1e3   :  { %v307_v29 = vpop.f32.mrf.mxu2 }
 0x1e4   :  { %v308_v30 = vadd.f32 %v410_v26, %v307_v29 }
 0x1e6   :  { %312 = vst.msk [vmem:[%s544_s7 + $0x8] sm:$0xff] %vm310_vm3, %v308_v30 }

</bundles_post_ra>
